<compile_context>
chip_gen: v7x
topology: tpu7x:2x2x1
jax: 0.10.0
libtpu: 0.0.40
codegen_flags: <defaults>
</compile_context>

<pallas_src>
import math

import jax
import jax.numpy as jnp
import numpy as np
from jax import lax
from jax.experimental import pallas as pl
from jax.experimental.pallas import tpu as pltpu

_MH_CONST = 2.0 / (math.sqrt(3.0) * math.pi ** 0.25)


def _mexican_hat(x):
    return _MH_CONST * (x * x - 1.0) * jnp.exp(-0.5 * x * x)


# TODO(synk): only the default 'mexican_hat' wavelet is implemented; the other
# elementwise wavelet variants (morlet/dog/meyer/shannon) are drop-in
# replacements of the wavelet expression and are omitted here.  Only the
# module's default stride=1 / dilation=1 / padding='same' path is handled.


def _make_kernel(C, O, lanes, KH, KW, ph, pw, W):
    CO = C * O
    T = KH * KW
    center = ph * KW + pw
    tap_order = [center] + [t for t in range(T) if t != center]

    def kernel(x_ref, mask_ref, affine_ref, wts_ref, o_ref):
        # x_ref:      (C, lanes)        lane-dense, batch merged into lanes
        # mask_ref:   (T, lanes)        per-tap validity masks, tiled per sample
        # affine_ref: (C, O, 2)         [..., 0] = 1/scale, [..., 1] = -trans/scale
        # wts_ref:    (T, O, C*O)       MH_CONST * w2[o',o] * w1[o,c,kh,kw]
        # o_ref:      (O, lanes)
        x = x_ref[...]                              # (C, lanes)
        iscale = affine_ref[:, :, 0:1]              # (C, O, 1)
        bias = affine_ref[:, :, 1:2]                # (C, O, 1)

        # Wavelet on real pixels only (MH_CONST folded into the weights).
        u = x[:, None, :] * iscale + bias           # (C, O, lanes)
        u2 = u * u
        wav = ((u2 - 1.0) * jnp.exp(-0.5 * u2)).reshape(CO, lanes)

        # Grouped 3x3 conv ('same' zero pad) + 1x1 mixing conv, folded into
        # 9 MXU matmuls; roll+mask the small (O, lanes) result per tap.
        acc = None
        for t in tap_order:
            kh, kw = t // KW, t % KW
            delta = (kh - ph) * W + (kw - pw)
            z = jnp.dot(wts_ref[t], wav, preferred_element_type=jnp.float32)
            if delta != 0:
                # output position p reads the tap result at p + delta; zero the
                # outputs whose source falls outside the (per-sample) image —
                # this reproduces PyTorch's zero padding of the wavelet and
                # also kills any cross-sample leakage from the merged lanes.
                z = pltpu.roll(z, shift=(-delta) % lanes, axis=1) * mask_ref[t]
            acc = z if acc is None else acc + z

        o_ref[...] = acc.astype(o_ref.dtype)

    return kernel


def wavelet_conv_fast(x, scale, trans, w1, w2, *, batch_block_target=32):
    """x: (N,C,H,W); scale/trans: (O,C); w1: (O,C,KH,KW) grouped; w2: (O,O)."""
    N, C, H, W = x.shape
    O = scale.shape[0]
    KH, KW = w1.shape[2], w1.shape[3]
    ph, pw = (KH - 1) // 2, (KW - 1) // 2
    HW = H * W
    CO = C * O
    T = KH * KW

    # --- batch blocking: >= ~128 KiB per step when N allows, but keep the
    #     grid >= 2 blocks so v7x's 2 TensorCores both get work.
    nblocks = max(1, -(-N // batch_block_target))
    if nblocks == 1 and N > 1:
        nblocks = 2
    B = -(-N // nblocks)
    Npad = nblocks * B
    lanes = B * HW

    # --- lane-dense input slab (C, Npad*HW): batch merged into the lane axis.
    xt = jnp.transpose(x.reshape(N, C, HW), (1, 0, 2)).astype(jnp.float32)
    if Npad != N:
        xt = jnp.pad(xt, ((0, 0), (0, Npad - N), (0, 0)))
    x_slab = xt.reshape(C, Npad * HW)

    # --- host-folded parameters ---------------------------------------------
    iscale = (1.0 / scale).astype(jnp.float32)                     # (O, C)
    bias = (-trans * iscale).astype(jnp.float32)                   # (O, C)
    affine = jnp.stack([jnp.transpose(iscale), jnp.transpose(bias)], axis=-1)  # (C,O,2)

    # folded per-tap weights: W_t[o', c*O+o] = MH_CONST * w2[o',o] * w1[o,c,kh,kw]
    w1_t = jnp.transpose(w1, (2, 3, 1, 0)).reshape(T, C, O)        # (T, C, O)
    wts = (_MH_CONST * jnp.einsum('po,tco->tpco', w2, w1_t)).reshape(T, O, CO)
    wts = wts.astype(jnp.float32)

    # per-tap validity masks (1 where the shifted source pixel is inside the
    # image), tiled across the B samples sharing the lane axis.
    hh, ww = np.meshgrid(np.arange(H), np.arange(W), indexing="ij")
    rows = []
    for kh in range(KH):
        for kw in range(KW):
            dh, dw = kh - ph, kw - pw
            valid = ((hh + dh >= 0) & (hh + dh < H)
                     & (ww + dw >= 0) & (ww + dw < W))
            rows.append(np.tile(valid.reshape(-1), B))
    masks = jnp.asarray(np.stack(rows).astype(np.float32))          # (T, lanes)

    kernel = _make_kernel(C, O, lanes, KH, KW, ph, pw, W)
    y_slab = pl.pallas_call(
        kernel,
        out_shape=jax.ShapeDtypeStruct((O, Npad * HW), jnp.float32),
        grid_spec=pltpu.PrefetchScalarGridSpec(
            num_scalar_prefetch=0,
            grid=(nblocks,),
            in_specs=[
                pl.BlockSpec((C, lanes), lambda i: (0, i)),
                pl.BlockSpec((T, lanes), lambda i: (0, 0)),
                pl.BlockSpec((C, O, 2), lambda i: (0, 0, 0)),
                pl.BlockSpec((T, O, CO), lambda i: (0, 0, 0)),
            ],
            out_specs=pl.BlockSpec((O, lanes), lambda i: (0, i)),
        ),
        compiler_params=pltpu.CompilerParams(
            dimension_semantics=("parallel",)),
    )(x_slab, masks, affine, wts)

    # layout plumbing back to (N, O, H, W)
    y = jnp.transpose(y_slab.reshape(O, Npad, HW), (1, 0, 2))[:N]
    return y.reshape(N, O, H, W)


def reference(x, scale, trans, w1, w2):
    """Pure-JAX reference mirroring WaveletConvNDFast.forward (mexican_hat)."""
    N, C, H, W = x.shape
    O = scale.shape[0]
    xs = (x[:, None] - trans[None, :, :, None, None]) / scale[None, :, :, None, None]
    wav = _mexican_hat(xs)                              # (N, O, C, H, W)
    wav_flat = wav.reshape(N, O * C, H, W)
    y1 = lax.conv_general_dilated(
        wav_flat, w1, window_strides=(1, 1), padding="SAME",
        dimension_numbers=("NCHW", "OIHW", "NCHW"), feature_group_count=O)
    y = lax.conv_general_dilated(
        y1, w2[:, :, None, None], window_strides=(1, 1), padding="VALID",
        dimension_numbers=("NCHW", "OIHW", "NCHW"))
    return y


if __name__ == "__main__":
    # Module config: conv_class=Conv2d, ndim=2, in_channels=4, out_channels=8,
    # kernel_size=3, stride=1, padding='same', dilation=1, wavelet='mexican_hat'
    N, C, O, H, W, K = 2, 4, 8, 16, 16, 3

    key = jax.random.PRNGKey(0)
    k1, k2, k3, k4, k5 = jax.random.split(key, 5)

    x = jax.random.normal(k1, (N, C, H, W), jnp.float32)

    # Parameters (shapes per WaveletConvNDFast.__init__, squeezed of size-1 dims).
    # Module init is scale=1, translation=0; we perturb deterministically so the
    # per-(out,in) broadcast path is actually exercised.
    scale = 1.0 + 0.25 * jax.random.uniform(k2, (O, C), jnp.float32)
    trans = 0.1 * jax.random.normal(k3, (O, C), jnp.float32)
    # kaiming_uniform (nonlinearity='linear'): bound = sqrt(3) / sqrt(fan_in)
    bound1 = math.sqrt(3.0) / math.sqrt(C * K * K)
    w1 = jax.random.uniform(k4, (O, C, K, K), jnp.float32, -bound1, bound1)
    bound2 = math.sqrt(3.0) / math.sqrt(O)
    w2 = jax.random.uniform(k5, (O, O), jnp.float32, -bound2, bound2)

    y = wavelet_conv_fast(x, scale, trans, w1, w2)
    y = jax.block_until_ready(y)

    y_ref = reference(x, scale, trans, w1, w2)
    err = float(jnp.max(jnp.abs(y - y_ref)))
    assert jnp.allclose(y, y_ref, atol=1e-4, rtol=1e-4), f"max abs err = {err}"
    print("KERNEL_OK")
</pallas_src>

<mosaic_0001>
module attributes {stable_mosaic.version = 11 : i64} {
  func.func @kernel(%arg0: i32, %arg1: memref<4x256xf32, #tpu.memory_space<vmem>>, %arg2: memref<9x256xf32, #tpu.memory_space<vmem>>, %arg3: memref<4x8x2xf32, #tpu.memory_space<vmem>>, %arg4: memref<9x8x32xf32, #tpu.memory_space<vmem>>, %arg5: memref<8x256xf32, #tpu.memory_space<vmem>>) attributes {dimension_semantics = [#tpu.dimension_semantics<parallel>], iteration_bounds = array<i64: 2>, scalar_prefetch = 0 : i64, scratch_operands = 0 : i64, tpu.core_type = #tpu.core_type<tc>, window_params = [{transform_indices = @transform_0, window_bounds = array<i64: 4, 256>}, {pipeline_mode = #tpu.pipeline_mode<synchronous>, transform_indices = @transform_1, window_bounds = array<i64: 9, 256>}, {pipeline_mode = #tpu.pipeline_mode<synchronous>, transform_indices = @transform_2, window_bounds = array<i64: 4, 8, 2>}, {pipeline_mode = #tpu.pipeline_mode<synchronous>, transform_indices = @transform_3, window_bounds = array<i64: 9, 8, 32>}, {transform_indices = @transform_4, window_bounds = array<i64: 8, 256>}]} {
    %c0 = arith.constant 0 : index
    %c0_0 = arith.constant 0 : index
    %0 = vector.load %arg1[%c0, %c0_0] : memref<4x256xf32, #tpu.memory_space<vmem>>, vector<4x256xf32>
    %c0_1 = arith.constant 0 : index
    %c0_2 = arith.constant 0 : index
    %c0_3 = arith.constant 0 : index
    %1 = vector.load %arg3[%c0_1, %c0_2, %c0_3] : memref<4x8x2xf32, #tpu.memory_space<vmem>>, vector<4x8x1xf32>
    %c0_4 = arith.constant 0 : index
    %c0_5 = arith.constant 0 : index
    %c1 = arith.constant 1 : index
    %2 = vector.load %arg3[%c0_4, %c0_5, %c1] : memref<4x8x2xf32, #tpu.memory_space<vmem>>, vector<4x8x1xf32>
    %3 = vector.shape_cast %0 : vector<4x256xf32> to vector<4x1x256xf32>
    %4 = vector.broadcast %3 : vector<4x1x256xf32> to vector<4x8x256xf32>
    %5 = vector.broadcast %1 : vector<4x8x1xf32> to vector<4x8x256xf32>
    %6 = arith.mulf %4, %5 : vector<4x8x256xf32>
    %7 = vector.broadcast %2 : vector<4x8x1xf32> to vector<4x8x256xf32>
    %8 = arith.addf %6, %7 : vector<4x8x256xf32>
    %9 = arith.mulf %8, %8 : vector<4x8x256xf32>
    %cst = arith.constant 1.000000e+00 : f32
    %10 = vector.broadcast %cst : f32 to vector<4x8x256xf32>
    %11 = arith.subf %9, %10 : vector<4x8x256xf32>
    %cst_6 = arith.constant -5.000000e-01 : f32
    %12 = vector.broadcast %cst_6 : f32 to vector<4x8x256xf32>
    %13 = arith.mulf %12, %9 : vector<4x8x256xf32>
    %14 = math.exp %13 : vector<4x8x256xf32>
    %15 = arith.mulf %11, %14 : vector<4x8x256xf32>
    %16 = vector.shape_cast %15 : vector<4x8x256xf32> to vector<32x256xf32>
    %c4 = arith.constant 4 : index
    %c0_7 = arith.constant 0 : index
    %c0_8 = arith.constant 0 : index
    %17 = vector.load %arg4[%c4, %c0_7, %c0_8] : memref<9x8x32xf32, #tpu.memory_space<vmem>>, vector<1x8x32xf32>
    %18 = vector.shape_cast %17 : vector<1x8x32xf32> to vector<8x32xf32>
    %cst_9 = arith.constant dense<0.000000e+00> : vector<8x256xf32>
    %19 = tpu.matmul %18, %16, %cst_9 {dimension_numbers = #tpu.dot_dimension_numbers<[1], [0], [0], [1], [0, 0, 1, 1], [], []>} : vector<8x32xf32>, vector<32x256xf32>, vector<8x256xf32> -> vector<8x256xf32>
    %c0_10 = arith.constant 0 : index
    %c0_11 = arith.constant 0 : index
    %c0_12 = arith.constant 0 : index
    %20 = vector.load %arg4[%c0_10, %c0_11, %c0_12] : memref<9x8x32xf32, #tpu.memory_space<vmem>>, vector<1x8x32xf32>
    %21 = vector.shape_cast %20 : vector<1x8x32xf32> to vector<8x32xf32>
    %cst_13 = arith.constant dense<0.000000e+00> : vector<8x256xf32>
    %22 = tpu.matmul %21, %16, %cst_13 {dimension_numbers = #tpu.dot_dimension_numbers<[1], [0], [0], [1], [0, 0, 1, 1], [], []>} : vector<8x32xf32>, vector<32x256xf32>, vector<8x256xf32> -> vector<8x256xf32>
    %c17_i32 = arith.constant 17 : i32
    %23 = tpu.dynamic_rotate %22 by %c17_i32 dim 1 : vector<8x256xf32>, i32 -> vector<8x256xf32>
    %c0_14 = arith.constant 0 : index
    %c0_15 = arith.constant 0 : index
    %24 = vector.load %arg2[%c0_14, %c0_15] : memref<9x256xf32, #tpu.memory_space<vmem>>, vector<1x256xf32>
    %25 = vector.shape_cast %24 : vector<1x256xf32> to vector<256xf32>
    %26 = vector.shape_cast %25 : vector<256xf32> to vector<1x256xf32>
    %27 = vector.broadcast %26 : vector<1x256xf32> to vector<8x256xf32>
    %28 = arith.mulf %23, %27 : vector<8x256xf32>
    %29 = arith.addf %19, %28 : vector<8x256xf32>
    %c1_16 = arith.constant 1 : index
    %c0_17 = arith.constant 0 : index
    %c0_18 = arith.constant 0 : index
    %30 = vector.load %arg4[%c1_16, %c0_17, %c0_18] : memref<9x8x32xf32, #tpu.memory_space<vmem>>, vector<1x8x32xf32>
    %31 = vector.shape_cast %30 : vector<1x8x32xf32> to vector<8x32xf32>
    %cst_19 = arith.constant dense<0.000000e+00> : vector<8x256xf32>
    %32 = tpu.matmul %31, %16, %cst_19 {dimension_numbers = #tpu.dot_dimension_numbers<[1], [0], [0], [1], [0, 0, 1, 1], [], []>} : vector<8x32xf32>, vector<32x256xf32>, vector<8x256xf32> -> vector<8x256xf32>
    %c16_i32 = arith.constant 16 : i32
    %33 = tpu.dynamic_rotate %32 by %c16_i32 dim 1 : vector<8x256xf32>, i32 -> vector<8x256xf32>
    %c1_20 = arith.constant 1 : index
    %c0_21 = arith.constant 0 : index
    %34 = vector.load %arg2[%c1_20, %c0_21] : memref<9x256xf32, #tpu.memory_space<vmem>>, vector<1x256xf32>
    %35 = vector.shape_cast %34 : vector<1x256xf32> to vector<256xf32>
    %36 = vector.shape_cast %35 : vector<256xf32> to vector<1x256xf32>
    %37 = vector.broadcast %36 : vector<1x256xf32> to vector<8x256xf32>
    %38 = arith.mulf %33, %37 : vector<8x256xf32>
    %39 = arith.addf %29, %38 : vector<8x256xf32>
    %c2 = arith.constant 2 : index
    %c0_22 = arith.constant 0 : index
    %c0_23 = arith.constant 0 : index
    %40 = vector.load %arg4[%c2, %c0_22, %c0_23] : memref<9x8x32xf32, #tpu.memory_space<vmem>>, vector<1x8x32xf32>
    %41 = vector.shape_cast %40 : vector<1x8x32xf32> to vector<8x32xf32>
    %cst_24 = arith.constant dense<0.000000e+00> : vector<8x256xf32>
    %42 = tpu.matmul %41, %16, %cst_24 {dimension_numbers = #tpu.dot_dimension_numbers<[1], [0], [0], [1], [0, 0, 1, 1], [], []>} : vector<8x32xf32>, vector<32x256xf32>, vector<8x256xf32> -> vector<8x256xf32>
    %c15_i32 = arith.constant 15 : i32
    %43 = tpu.dynamic_rotate %42 by %c15_i32 dim 1 : vector<8x256xf32>, i32 -> vector<8x256xf32>
    %c2_25 = arith.constant 2 : index
    %c0_26 = arith.constant 0 : index
    %44 = vector.load %arg2[%c2_25, %c0_26] : memref<9x256xf32, #tpu.memory_space<vmem>>, vector<1x256xf32>
    %45 = vector.shape_cast %44 : vector<1x256xf32> to vector<256xf32>
    %46 = vector.shape_cast %45 : vector<256xf32> to vector<1x256xf32>
    %47 = vector.broadcast %46 : vector<1x256xf32> to vector<8x256xf32>
    %48 = arith.mulf %43, %47 : vector<8x256xf32>
    %49 = arith.addf %39, %48 : vector<8x256xf32>
    %c3 = arith.constant 3 : index
    %c0_27 = arith.constant 0 : index
    %c0_28 = arith.constant 0 : index
    %50 = vector.load %arg4[%c3, %c0_27, %c0_28] : memref<9x8x32xf32, #tpu.memory_space<vmem>>, vector<1x8x32xf32>
    %51 = vector.shape_cast %50 : vector<1x8x32xf32> to vector<8x32xf32>
    %cst_29 = arith.constant dense<0.000000e+00> : vector<8x256xf32>
    %52 = tpu.matmul %51, %16, %cst_29 {dimension_numbers = #tpu.dot_dimension_numbers<[1], [0], [0], [1], [0, 0, 1, 1], [], []>} : vector<8x32xf32>, vector<32x256xf32>, vector<8x256xf32> -> vector<8x256xf32>
    %c1_i32 = arith.constant 1 : i32
    %53 = tpu.dynamic_rotate %52 by %c1_i32 dim 1 : vector<8x256xf32>, i32 -> vector<8x256xf32>
    %c3_30 = arith.constant 3 : index
    %c0_31 = arith.constant 0 : index
    %54 = vector.load %arg2[%c3_30, %c0_31] : memref<9x256xf32, #tpu.memory_space<vmem>>, vector<1x256xf32>
    %55 = vector.shape_cast %54 : vector<1x256xf32> to vector<256xf32>
    %56 = vector.shape_cast %55 : vector<256xf32> to vector<1x256xf32>
    %57 = vector.broadcast %56 : vector<1x256xf32> to vector<8x256xf32>
    %58 = arith.mulf %53, %57 : vector<8x256xf32>
    %59 = arith.addf %49, %58 : vector<8x256xf32>
    %c5 = arith.constant 5 : index
    %c0_32 = arith.constant 0 : index
    %c0_33 = arith.constant 0 : index
    %60 = vector.load %arg4[%c5, %c0_32, %c0_33] : memref<9x8x32xf32, #tpu.memory_space<vmem>>, vector<1x8x32xf32>
    %61 = vector.shape_cast %60 : vector<1x8x32xf32> to vector<8x32xf32>
    %cst_34 = arith.constant dense<0.000000e+00> : vector<8x256xf32>
    %62 = tpu.matmul %61, %16, %cst_34 {dimension_numbers = #tpu.dot_dimension_numbers<[1], [0], [0], [1], [0, 0, 1, 1], [], []>} : vector<8x32xf32>, vector<32x256xf32>, vector<8x256xf32> -> vector<8x256xf32>
    %c255_i32 = arith.constant 255 : i32
    %63 = tpu.dynamic_rotate %62 by %c255_i32 dim 1 : vector<8x256xf32>, i32 -> vector<8x256xf32>
    %c5_35 = arith.constant 5 : index
    %c0_36 = arith.constant 0 : index
    %64 = vector.load %arg2[%c5_35, %c0_36] : memref<9x256xf32, #tpu.memory_space<vmem>>, vector<1x256xf32>
    %65 = vector.shape_cast %64 : vector<1x256xf32> to vector<256xf32>
    %66 = vector.shape_cast %65 : vector<256xf32> to vector<1x256xf32>
    %67 = vector.broadcast %66 : vector<1x256xf32> to vector<8x256xf32>
    %68 = arith.mulf %63, %67 : vector<8x256xf32>
    %69 = arith.addf %59, %68 : vector<8x256xf32>
    %c6 = arith.constant 6 : index
    %c0_37 = arith.constant 0 : index
    %c0_38 = arith.constant 0 : index
    %70 = vector.load %arg4[%c6, %c0_37, %c0_38] : memref<9x8x32xf32, #tpu.memory_space<vmem>>, vector<1x8x32xf32>
    %71 = vector.shape_cast %70 : vector<1x8x32xf32> to vector<8x32xf32>
    %cst_39 = arith.constant dense<0.000000e+00> : vector<8x256xf32>
    %72 = tpu.matmul %71, %16, %cst_39 {dimension_numbers = #tpu.dot_dimension_numbers<[1], [0], [0], [1], [0, 0, 1, 1], [], []>} : vector<8x32xf32>, vector<32x256xf32>, vector<8x256xf32> -> vector<8x256xf32>
    %c241_i32 = arith.constant 241 : i32
    %73 = tpu.dynamic_rotate %72 by %c241_i32 dim 1 : vector<8x256xf32>, i32 -> vector<8x256xf32>
    %c6_40 = arith.constant 6 : index
    %c0_41 = arith.constant 0 : index
    %74 = vector.load %arg2[%c6_40, %c0_41] : memref<9x256xf32, #tpu.memory_space<vmem>>, vector<1x256xf32>
    %75 = vector.shape_cast %74 : vector<1x256xf32> to vector<256xf32>
    %76 = vector.shape_cast %75 : vector<256xf32> to vector<1x256xf32>
    %77 = vector.broadcast %76 : vector<1x256xf32> to vector<8x256xf32>
    %78 = arith.mulf %73, %77 : vector<8x256xf32>
    %79 = arith.addf %69, %78 : vector<8x256xf32>
    %c7 = arith.constant 7 : index
    %c0_42 = arith.constant 0 : index
    %c0_43 = arith.constant 0 : index
    %80 = vector.load %arg4[%c7, %c0_42, %c0_43] : memref<9x8x32xf32, #tpu.memory_space<vmem>>, vector<1x8x32xf32>
    %81 = vector.shape_cast %80 : vector<1x8x32xf32> to vector<8x32xf32>
    %cst_44 = arith.constant dense<0.000000e+00> : vector<8x256xf32>
    %82 = tpu.matmul %81, %16, %cst_44 {dimension_numbers = #tpu.dot_dimension_numbers<[1], [0], [0], [1], [0, 0, 1, 1], [], []>} : vector<8x32xf32>, vector<32x256xf32>, vector<8x256xf32> -> vector<8x256xf32>
    %c240_i32 = arith.constant 240 : i32
    %83 = tpu.dynamic_rotate %82 by %c240_i32 dim 1 : vector<8x256xf32>, i32 -> vector<8x256xf32>
    %c7_45 = arith.constant 7 : index
    %c0_46 = arith.constant 0 : index
    %84 = vector.load %arg2[%c7_45, %c0_46] : memref<9x256xf32, #tpu.memory_space<vmem>>, vector<1x256xf32>
    %85 = vector.shape_cast %84 : vector<1x256xf32> to vector<256xf32>
    %86 = vector.shape_cast %85 : vector<256xf32> to vector<1x256xf32>
    %87 = vector.broadcast %86 : vector<1x256xf32> to vector<8x256xf32>
    %88 = arith.mulf %83, %87 : vector<8x256xf32>
    %89 = arith.addf %79, %88 : vector<8x256xf32>
    %c8 = arith.constant 8 : index
    %c0_47 = arith.constant 0 : index
    %c0_48 = arith.constant 0 : index
    %90 = vector.load %arg4[%c8, %c0_47, %c0_48] : memref<9x8x32xf32, #tpu.memory_space<vmem>>, vector<1x8x32xf32>
    %91 = vector.shape_cast %90 : vector<1x8x32xf32> to vector<8x32xf32>
    %cst_49 = arith.constant dense<0.000000e+00> : vector<8x256xf32>
    %92 = tpu.matmul %91, %16, %cst_49 {dimension_numbers = #tpu.dot_dimension_numbers<[1], [0], [0], [1], [0, 0, 1, 1], [], []>} : vector<8x32xf32>, vector<32x256xf32>, vector<8x256xf32> -> vector<8x256xf32>
    %c239_i32 = arith.constant 239 : i32
    %93 = tpu.dynamic_rotate %92 by %c239_i32 dim 1 : vector<8x256xf32>, i32 -> vector<8x256xf32>
    %c8_50 = arith.constant 8 : index
    %c0_51 = arith.constant 0 : index
    %94 = vector.load %arg2[%c8_50, %c0_51] : memref<9x256xf32, #tpu.memory_space<vmem>>, vector<1x256xf32>
    %95 = vector.shape_cast %94 : vector<1x256xf32> to vector<256xf32>
    %96 = vector.shape_cast %95 : vector<256xf32> to vector<1x256xf32>
    %97 = vector.broadcast %96 : vector<1x256xf32> to vector<8x256xf32>
    %98 = arith.mulf %93, %97 : vector<8x256xf32>
    %99 = arith.addf %89, %98 : vector<8x256xf32>
    %c0_52 = arith.constant 0 : index
    %c0_53 = arith.constant 0 : index
    %100 = vector.load %arg5[%c0_52, %c0_53] : memref<8x256xf32, #tpu.memory_space<vmem>>, vector<8x256xf32>
    tpu.vector_store %arg5[%c0_52, %c0_53], %99 {strides = array<i32>} : memref<8x256xf32, #tpu.memory_space<vmem>>, vector<8x256xf32>,
    return
  }
  func.func @transform_0(%arg0: i32) -> (i32, i32) {
    %c0_i32 = arith.constant 0 : i32
    %c0_i32_0 = arith.constant 0 : i32
    return %c0_i32, %arg0 : i32, i32
  }
  func.func @transform_1(%arg0: i32) -> (i32, i32) {
    %c0_i32 = arith.constant 0 : i32
    %c0_i32_0 = arith.constant 0 : i32
    %c0_i32_1 = arith.constant 0 : i32
    return %c0_i32, %c0_i32_0 : i32, i32
  }
  func.func @transform_2(%arg0: i32) -> (i32, i32, i32) {
    %c0_i32 = arith.constant 0 : i32
    %c0_i32_0 = arith.constant 0 : i32
    %c0_i32_1 = arith.constant 0 : i32
    %c0_i32_2 = arith.constant 0 : i32
    return %c0_i32, %c0_i32_0, %c0_i32_1 : i32, i32, i32
  }
  func.func @transform_3(%arg0: i32) -> (i32, i32, i32) {
    %c0_i32 = arith.constant 0 : i32
    %c0_i32_0 = arith.constant 0 : i32
    %c0_i32_1 = arith.constant 0 : i32
    %c0_i32_2 = arith.constant 0 : i32
    return %c0_i32, %c0_i32_0, %c0_i32_1 : i32, i32, i32
  }
  func.func @transform_4(%arg0: i32) -> (i32, i32) {
    %c0_i32 = arith.constant 0 : i32
    %c0_i32_0 = arith.constant 0 : i32
    return %c0_i32, %arg0 : i32, i32
  }
}

</mosaic_0001>

<bundles_post_ra>
// kernel: tpu_custom_call.1
= control target key start
LH: loop header
LB: loop body
LE: loop exit
PB: predicated region body
PF: predicated region fallthrough
CT: control target
= control target key end

     0   :  { %9 = vsyncpa [#allocation3], 0  ;;  %s2068_s0 = inlined_call_operand.hbm [shape: f32[4,512], index: 0, kind: input, shape index: {}]   ;;  %s2069_s1 = inlined_call_operand.vmem [shape: f32[9,256], index: 1, kind: input, shape index: {}]   ;;  %s2070_s2 = inlined_call_operand.vmem [shape: f32[4,8,2], index: 2, kind: input, shape index: {}]   ;;  %s2071_s3 = inlined_call_operand.hbm [shape: f32[9,8,32], index: 3, kind: input, shape index: {}]   ;;  %s2072_s4 = inlined_call_operand.hbm [shape: f32[8,512], index: 4, kind: output, shape index: {}]  }
   0x1   :  { %11 = vsyncpa [#allocation3 + $0x1], 0 }
   0x2   :  { %12 = vsyncpa [#allocation6], 0 }
   0x3   :  { %13 = vsyncpa [#allocation4], 0 }
   0x4   :  { %15 = vsyncpa [#allocation4 + $0x1], 0  ;;  %s1752_s15 = smov 0   ;;  %s1754_s16 = smov 0  }
   0x5   :  { %s1756_s17 = smov 0   ;;  %s1758_s18 = smov 0  }
   0x6 LB: > { %s1773_s19 = sadd.s32 4294967295, %s1708_s18   ;;  %s1373_s20 = sadd.s32 4294967294, %s1708_s18   ;;  %s1708_s18 = sphi %s1758_s18, %s2092_s18   ;;  %s1704_s17 = sphi %s1756_s17, %s2091_s17   ;;  %s1700_s16 = sphi %s1754_s16, %s2090_s16   ;;  %s1696_s15 = sphi %s1752_s15, %s2089_s15  }
   0x7   : > { %p41_p0 = scmp.ne.s32.totalorder %s1700_s16, %s1696_s15  ;;  %p2073_p1 = scmp.eq.s32.totalorder %s1773_s19, 0 }
   0x8   : > { %p134_p3 = scmp.eq.s32.totalorder %s1373_s20, 1  ;;  %p1374_p5 = scmp.ge.s32.totalorder %s1708_s18, 1 }
   0x9   : > { %p1782_p4 = por %p2073_p1, %p41_p0  ;;  %p141_p7 = scmp.lt.s32.totalorder %s1708_s18, 3 }
   0xa   : > { %p1787_p6 = por %p134_p3, %p41_p0  ;;  %s1710_s24 = smov [#allocation5]  }
   0xb   : > { %s2076_s21 = scalar_select %p1782_p4, 1, 0 }
   0xc   : > { %s2077_s22 = scalar_select %p1787_p6, 1, 0 }
   0xd   : > { %p1792_p8 = pnand %p1374_p5, %p141_p7  ;;  %s159_s25 = sshll.u32 %s1710_s24, 4  ;;  %s1796_s25 = int_to_ptr.vmem [resolvable:$true] %s159_s25 }
   0xe   : > { %s1808_s27 = sadd.s32 1, %s1708_s18   ;;  %s28_s28 = sadd.s32 1, %s1704_s17 }
   0xf   : > { %s2078_s23 = scalar_select %p1792_p8, 1, 0 }
  0x10   : > { %p1496_p9 = pneg %p1792_p8  ;;  %s25_s29 = ssub.s32 %s1708_s18, %s1808_s27 }
  0x11   : > { %s1580_s6 = scalar_lea.hbm %s2071_s3, 1152 }
  0x12   : > { %p1803_p11 = pnand %p1496_p9, %p2073_p1  ;;  %p1581_p12 = scmp.ne.s32.totalorder %s2071_s3, %s1580_s6 }
  0x13   : > { %p1587_p5 = scmp.lt.u32.totalorder %s1580_s6, %s2071_s3 }
  0x14   : > { %p1582_p13 = pneg %p1803_p11 }
  0x16   : > { %p1583_p0 = pnand %p1582_p13, %p1581_p12 }
  0x18   : > { %p1584_p3 = pneg %p1583_p0 }
  0x1a   : > { %p1589_p7 = pnand %p1587_p5, %p1584_p3 }
  0x1c   : > { %1592 = shalt.err (!%p1589_p7)
}
  0x1d   : > { %s1593_s11 = scalar_lea.vmem %s1796_s25, 1152  ;;  %p1601_p2 = scmp.lt.s32.totalorder %s1796_s25, %s1796_s25 }
  0x1e   : > { %p1594_p9 = scmp.ne.s32.totalorder %s1796_s25, %s1593_s11  ;;  %p1602_p6 = scmp.lt.s32.totalorder %s1593_s11, %s1593_s11 }
  0x20   : > { %p1596_p10 = pnand %p1594_p9, %p1582_p13  ;;  %p1603_p4 = por %p1602_p6, %p1601_p2 }
  0x22   : > { %p1597_p1 = pneg %p1596_p10 }
  0x24   : > { %p1604_p8 = pnand %p1603_p4, %p1597_p1 }
  0x26   : > { %1607 = shalt.err (!%p1604_p8)
}
  0x27   : > { %s1711_s12 = smov 128   ;;  %s1712_s13 = smov 8  }
  0x28   : > { %1499 = dma.hbm_to_vmem [thread:$0]  (!%p1803_p11), %s2071_s3, 1152, %s1796_s25, [#allocation6], %s1711_s12, %s1711_s12, %s1712_s13  }
  0x29   : > { %p26_p2 = scmp.eq.s32.totalorder %s25_s29, 0  ;;  %p35_p1 = scmp.ne.s32.totalorder %s1704_s17, %s1700_s16 }
  0x2a   : > { %p36_p4 = scmp.eq.s32.totalorder %s1708_s18, 0  ;;  %p1509_p6 = scmp.lt.s32.totalorder %s1708_s18, 2 }
  0x2b   : > { %s1839_s24 = scalar_select %p26_p2, %s1704_s17, %s28_s28  }
  0x2c   : > { %p37_p8 = por %p36_p4, %p35_p1  ;;  %p2080_p10 = scmp.eq.s32.totalorder %s1773_s19, 1 }
  0x2d   : > { %s173_s5 = sand.u32 1, %s1704_s17   ;;  %s1414_s6 = sshll.u32 %s1708_s18, 7 }
  0x2e   : > { %p1843_p12 = por %p2080_p10, %p35_p1  ;;  %s1377_s7 = sshll.u32 %s173_s5, 3 }
  0x2f   : > { %s1852_s9 = scalar_lea.hbm %s2068_s0, %s1414_s6  ;;  %s177_s25 = scalar_lea.vmem [#allocation2], %s1377_s7 }
  0x30   : > { %s185_s28 = sshll.u32 %s177_s25, 4  ;;  %p1854_p11 = pnand %p1509_p6, %p37_p8  ;;  %s1858_s28 = int_to_ptr.vmem [resolvable:$true] %s185_s28 }
  0x31   : > { %s174_s10 = scalar_lea.sflag [#allocation3], %s173_s5  ;;  %s1608_s11 = scalar_lea.hbm %s1852_s9, 128 }
  0x32   : > { %p1609_p13 = scmp.ne.s32.totalorder %s1852_s9, %s1608_s11  ;;  %p1610_p0 = pneg %p1854_p11 }
  0x33   : > { %s1613_s14 = scalar_lea.hbm %s2068_s0, 256  ;;  %p1614_p7 = scmp.lt.u32.totalorder %s1852_s9, %s2068_s0 }
  0x34   : > { %p1611_p3 = pnand %p1610_p0, %p1609_p13  ;;  %p1615_p9 = scmp.lt.u32.totalorder %s1613_s14, %s1608_s11 }
  0x35   : > { %p1617_p1 = scmp.lt.u32.totalorder %s1608_s11, %s1852_s9 }
  0x36   : > { %p1612_p5 = pneg %p1611_p3  ;;  %p1616_p2 = por %p1615_p9, %p1614_p7 }
  0x38   : > { %p1618_p4 = por %p1617_p1, %p1616_p2 }
  0x3a   : > { %p1619_p6 = pnand %p1618_p4, %p1612_p5 }
  0x3c   : > { %1622 = shalt.err (!%p1619_p6)
}
  0x3d   : > { %s1623_s5 = scalar_lea.vmem %s1858_s28, 128  ;;  %s1713_s7 = smov [#allocation2]  }
  0x3e   : > { %p1624_p8 = scmp.ne.s32.totalorder %s1858_s28, %s1623_s5  ;;  %s1628_s26 = sshll.u32 %s1713_s7, 4  ;;  %s1629_s26 = int_to_ptr.vmem [resolvable:$false] %s1628_s26 }
  0x3f   : > { %s1630_s8 = scalar_lea.vmem %s1629_s26, 256  ;;  %p1631_p3 = scmp.lt.s32.totalorder %s1858_s28, %s1629_s26 }
  0x40   : > { %p1626_p10 = pnand %p1624_p8, %p1610_p0  ;;  %p1632_p7 = scmp.lt.s32.totalorder %s1630_s8, %s1623_s5 }
  0x42   : > { %p1627_p13 = pneg %p1626_p10  ;;  %p1633_p9 = por %p1632_p7, %p1631_p3 }
  0x44   : > { %p1634_p2 = pnand %p1633_p9, %p1627_p13 }
  0x46   : > { %1637 = shalt.err (!%p1634_p2)
}
  0x47   : > { %1503 = dma.hbm_to_vmem [thread:$0]  (!%p1854_p11), %s1852_s9, 128, %s1858_s28, %s174_s10  }
  0x48   : > { %p2083_p5 = scmp.ne.s32.totalorder %s2078_s23, 0 }
  0x49   : > { %s1888_s25 = sand.u32 (!%p2083_p5), 1, %s1700_s16   ;;  %p2084_p0 = scmp.ne.s32.totalorder (!%p2083_p5), %s2076_s21, 0 }
  0x4a   : > { %194 = sbr.rel (%p2083_p5) target bundleno = 637 (0x27d), region = 36  ;;  %s1381_s11 = sshll.u32 (!%p2083_p5), %s1888_s25, 3 }
  0x4b   : > { %s197_s12 = scalar_lea.sflag (!%p2083_p5), [#allocation3], %s1888_s25  ;;  %s1892_s13 = scalar_lea.vmem (!%p2083_p5), [#allocation2], %s1381_s11 }
  0x51   : > { %1683 = dma.done.wait (%p2084_p0), %s197_s12, 128  }
  0x52   : > { %1685 = vsyncadd (%p2084_p0), %s197_s12, 4294967168  ;;  %p2085_p11 = scmp.eq.s32.totalorder %s1773_s19, 0 }
  0x54   : > { %1687 = dma.done.wait (%p2085_p11), [#allocation6], 1152   ;;  %p2086_p1 = pmov %p2085_p11 }
  0x55   : > { %v1714_v0 = vmov 1   ;;  %v1715_v1 = vmov 0   ;;  %v232_v2 = vld [vmem:[%s2070_s2] sm:$0xff]  ;;  %v233_v3 = vld [vmem:[%s2070_s2 + $0x8] sm:$0xff]  ;;  %v234_v4 = vld [vmem:[%s2070_s2 + $0x10] sm:$0xff]  ;;  %v1716_v6 = vmov 0.0   ;;  %v248_v9 = vlaneseq }
  0x56   : > { %1689 = vsyncadd (%p2086_p1), [#allocation6], 4294966144  ;;  %1560 = vset.pattern.permute.xlu1 %v1714_v0  ;;  %1559 = vset.pattern.permute.xlu0 %v1715_v1  ;;  %v235_v5 = vld [vmem:[%s2070_s2 + $0x18] sm:$0xff]  ;;  %v1717_v7 = vmov 1966171168   ;;  %vm404_vm0 = vcmask 261120  }
  0x57   : > { %330 = vperm.xlu1 %1560, %v232_v2   ;;  %303 = vperm.xlu0 %1559, %v232_v2   ;;  %v246_v8 = vunpack.c.l.s4 %v1717_v7  ;;  %v249_v11 = vshrl.u32 %v248_v9, 7  ;;  %v1384_v13 = vld.sshfl [vmem:[%s1892_s13] sm:$0xff pattern:$0x75316420]  ;;  %s1718_s6 = smov 17   ;;  %s1719_s5 = smov 16  }
  0x58   : > { %472 = vmatprep.mubr.f32.mxu0 %v1716_v6  ;;  %569 = vmatprep.mubr.f32.mxu1 %v1716_v6  ;;  %v244_v17 = vcombine.high %v1384_v13, %v1384_v13  ;;  %s1720_s7 = smov 15   ;;  %s1721_s26 = smov 1  }
  0x59   : > { %v247_v10 = vunpack.c.0.s8 %v246_v8  ;;  %v1918_v14 = vsub.s32 0, %v249_v11  ;;  %v1920_v15 = vsub.s32 1, %v249_v11  ;;  %s1722_s8 = smov 127   ;;  %s1723_s11 = smov 113  }
  0x5a   : > { %s1724_s12 = smov 112   ;;  %s1725_s13 = smov 111  }
  0x5b   : > { %334 = vperm.xlu1 %1560, %v233_v3   ;;  %308 = vperm.xlu0 %1559, %v233_v3   ;;  %v250_v12 = vsub.s32 %v247_v10, %v249_v11  ;;  %s1383_s23 = sshll.u32 %s1888_s25, 4  ;;  %s1415_s9 = sshll.u32 %s1773_s19, 8 }
  0x5c   : > { %s228_s28 = scalar_lea.vmem [#allocation7], %s1383_s23  ;;  %s2024_s14 = scalar_lea.hbm %s2072_s4, %s1415_s9 }
  0x5d   : > { %v251_v16 = vrot.slane %v1384_v13, %v250_v12  ;;  %v258_v20 = vrot.slane %v244_v17, %v250_v12  ;;  %s1293_s29 = sshll.u32 %s228_s28, 4  ;;  %s1279_s20 = scalar_lea.sflag [#allocation4], %s1888_s25  ;;  %s2026_s29 = int_to_ptr.vmem [resolvable:$true] %s1293_s29 }
  0x5e   : > { %s1638_s19 = scalar_lea.vmem %s2026_s29, 256 }
  0x5f   : > { %1561 = vset.pattern.permute.xlu1 %v1715_v1  ;;  %313 = vperm.xlu0 %1559, %v234_v4   ;;  %v264_v18 = vrot.slane %v251_v16, %v1918_v14  ;;  %v268_v19 = vrot.slane %v251_v16, %v1920_v15  ;;  %v272_v25 = vrot.slane %v258_v20, %v1918_v14  ;;  %p1639_p4 = scmp.ne.s32.totalorder %s2026_s29, %s1638_s19 }
  0x60   : > { %318 = vperm.xlu1 %1561, %v235_v5   ;;  %v276_v26 = vrot.slane %v258_v20, %v1920_v15  ;;  %v259_v31 = vcombine.high %v251_v16, %v251_v16  ;;  %v260_v32 = vcombine.high %v258_v20, %v258_v20 }
  0x61   : > { %p1640_p6 = pnand %p1639_p4, %p1843_p12 }
  0x62   : > { %v280_v42 = vrot.slane %v259_v31, %v1918_v14  ;;  %v284_v43 = vrot.slane %v259_v31, %v1920_v15  ;;  %v288_v45 = vrot.slane %v260_v32, %v1918_v14  ;;  %v292_v46 = vrot.slane %v260_v32, %v1920_v15 }
  0x63   : > { %1562 = vset.pattern.permute.xlu0 %v1714_v0  ;;  %p1641_p8 = pneg %p1640_p6 }
  0x64   : > { %1563 = vset.pattern.permute.xlu1 %v1714_v0  ;;  %338 = vperm.xlu0 %1562, %v234_v4  }
  0x65   : > { %342 = vperm.xlu1 %1563, %v235_v5  }
  0xd6   : > { %v331_v21 = vpop.permute.xlu1 %330  ;;  %v304_v22 = vpop.permute.xlu0 %303 }
  0xd7   : > { %v321_v23 = vmul.f32 %v304_v22, %v264_v18  ;;  %v322_v24 = vmul.f32 %v304_v22, %v268_v19 }
  0xd9   : > { %v345_v27 = vadd.f32 %v331_v21, %v321_v23  ;;  %v346_v28 = vadd.f32 %v331_v21, %v322_v24 }
  0xda   : > { %v335_v29 = vpop.permute.xlu1 %334  ;;  %v309_v30 = vpop.permute.xlu0 %308 }
  0xdb   : > { %v353_v33 = vmul.f32 %v345_v27, %v345_v27  ;;  %v354_v34 = vmul.f32 %v346_v28, %v346_v28  ;;  %v323_v35 = vmul.f32 %v309_v30, %v272_v25  ;;  %v324_v36 = vmul.f32 %v309_v30, %v276_v26 }
  0xdd   : > { %v369_v37 = vmul.f32 -0.5, %v353_v33  ;;  %v370_v38 = vmul.f32 -0.5, %v354_v34  ;;  %v347_v39 = vadd.f32 %v335_v29, %v323_v35  ;;  %v348_v40 = vadd.f32 %v335_v29, %v324_v36 }
  0xde   : > { %v314_v41 = vpop.permute.xlu0 %313  ;;  %v1385_v19 = vadd.f32 -1.0, %v353_v33  ;;  %v1386_v22 = vadd.f32 -1.0, %v354_v34 }
  0xdf   : > { %v319_v44 = vpop.permute.xlu1 %318  ;;  %v377_v47 = vmul.f32 1.442695, %v369_v37  ;;  %v355_v48 = vmul.f32 %v347_v39, %v347_v39  ;;  %v356_v49 = vmul.f32 %v348_v40, %v348_v40  ;;  %v379_v50 = vmul.f32 1.442695, %v370_v38 }
  0xe0   : > { %v325_v52 = vmul.f32 %v314_v41, %v280_v42  ;;  %v326_v53 = vmul.f32 %v314_v41, %v284_v43  ;;  %v327_v55 = vmul.f32 %v319_v44, %v288_v45  ;;  %v328_v56 = vmul.f32 %v319_v44, %v292_v46  ;;  %v403_v45 = vld [vmem:[#allocation5] sm:$0xff] }
  0xe1   : > { %v371_v51 = vmul.f32 -0.5, %v355_v48  ;;  %v372_v54 = vmul.f32 -0.5, %v356_v49  ;;  %1564 = vpow2.f32 %v377_v47  ;;  %v1387_v20 = vadd.f32 -1.0, %v355_v48  ;;  %v402_v46 = vld [vmem:[#allocation5 + $0x20] sm:$0xff]  ;;  %v577_v47 = vld [vmem:[#allocation5 + $0x8] sm:$0xff]  ;;  %v677_v48 = vld [vmem:[#allocation5 + $0x10] sm:$0xff] }
  0xe2   : > { %1566 = vpow2.f32 %v379_v50  ;;  %v1388_v23 = vadd.f32 -1.0, %v356_v49  ;;  %v777_v49 = vld [vmem:[#allocation5 + $0x18] sm:$0xff]  ;;  %v877_v50 = vld [vmem:[#allocation5 + $0x28] sm:$0xff] }
  0xe3   : > { %v339_v57 = vpop.permute.xlu0 %338  ;;  %v381_v58 = vmul.f32 1.442695, %v371_v51  ;;  %v383_v62 = vmul.f32 1.442695, %v372_v54  ;;  %v977_v51 = vld [vmem:[#allocation5 + $0x30] sm:$0xff] }
  0xe4   : > { %v349_v59 = vadd.f32 %v339_v57, %v325_v52  ;;  %v350_v60 = vadd.f32 %v339_v57, %v326_v53  ;;  %v343_v61 = vpop.permute.xlu1 %342  ;;  %v1077_v52 = vld [vmem:[#allocation5 + $0x38] sm:$0xff]  ;;  %v1177_v53 = vld [vmem:[#allocation5 + $0x40] sm:$0xff] }
  0xe5   : > { %v351_v63 = vadd.f32 %v343_v61, %v327_v55  ;;  %v352_v0 = vadd.f32 %v343_v61, %v328_v56  ;;  %1568 = vpow2.f32 %v381_v58 }
  0xe6   : > { %v357_v1 = vmul.f32 %v349_v59, %v349_v59  ;;  %v358_v2 = vmul.f32 %v350_v60, %v350_v60  ;;  %1570 = vpow2.f32 %v383_v62 }
  0xe7   : > { %v359_v3 = vmul.f32 %v351_v63, %v351_v63  ;;  %v360_v4 = vmul.f32 %v352_v0, %v352_v0 }
  0xe8   : > { %v373_v5 = vmul.f32 -0.5, %v357_v1  ;;  %v374_v7 = vmul.f32 -0.5, %v358_v2  ;;  %v1389_v31 = vadd.f32 -1.0, %v357_v1  ;;  %v1390_v35 = vadd.f32 -1.0, %v358_v2 }
  0xe9   : > { %v375_v8 = vmul.f32 -0.5, %v359_v3  ;;  %v376_v10 = vmul.f32 -0.5, %v360_v4  ;;  %v1391_v34 = vadd.f32 -1.0, %v359_v3  ;;  %v1392_v39 = vadd.f32 -1.0, %v360_v4 }
  0xea   : > { %v385_v11 = vmul.f32 1.442695, %v373_v5  ;;  %v387_v12 = vmul.f32 1.442695, %v374_v7 }
  0xeb   : > { %v389_v13 = vmul.f32 1.442695, %v375_v8  ;;  %v391_v16 = vmul.f32 1.442695, %v376_v10  ;;  %v1565_v17 = vpop.eup %1564  ;;  %v1969_v8 = vand.u32 127, %v248_v9 }
  0xec   : > { %1572 = vpow2.f32 %v385_v11  ;;  %v1567_v18 = vpop.eup %1566  ;;  %v393_v25 = vmul.f32 %v1565_v17, %v1385_v19  ;;  %v488_v10 = vld [vmem:[%s2069_s1] ss:$8 sm:$0x3]  ;;  %v1396_v9 = vld [vmem:[%s2069_s1 + $0x1] ss:$8 sm:$0x3] }
  0xed   : > { %1574 = vpow2.f32 %v387_v12  ;;  %v394_v27 = vmul.f32 %v1567_v18, %v1386_v22  ;;  %vm485_vm1 = vcmp.lt.s32.totalorder %v1969_v8, 17  ;;  %v493_v11 = vrot.slane %v488_v10, %v1918_v14 }
  0xee   : > { %1576 = vpow2.f32 %v389_v13  ;;  %v497_v12 = vrot.slane %v488_v10, %v1920_v15  ;;  %vm656_vm2 = vcmp.lt.s32.totalorder %v1969_v8, 16  ;;  %vm756_vm3 = vcmp.lt.s32.totalorder %v1969_v8, 15 }
  0xef   : > { %1578 = vpow2.f32 %v391_v16  ;;  %v1569_v21 = vpop.eup %1568  ;;  %vm856_vm4 = vcmp.lt.s32.totalorder %v1969_v8, 1  ;;  %vm956_vm5 = vcmp.lt.s32.totalorder %v1969_v8, 127  ;;  %vm1056_vm6 = vcmp.lt.s32.totalorder %v1969_v8, 113 }
  0xf0   : > { %v1571_v24 = vpop.eup %1570  ;;  %v395_v26 = vmul.f32 %v1569_v21, %v1387_v20  ;;  %vm1156_vm7 = vcmp.lt.s32.totalorder %v1969_v8, 112  ;;  %vm1256_vm8 = vcmp.lt.s32.totalorder %v1969_v8, 111 }
  0xf1   : > { %v396_v28 = vmul.f32 %v1571_v24, %v1388_v23  ;;  %v665_v23 = vrot.slane %v1396_v9, %v1918_v14  ;;  %v669_v24 = vrot.slane %v1396_v9, %v1920_v15 }
  0xf2   : > { %v1930_v29 = vpack.c.bf16 %v395_v26, %v393_v25  ;;  %v1398_v26 = vld [vmem:[%s2069_s1 + $0x2] ss:$8 sm:$0x3] }
  0xf3   : > { %v1932_v30 = vpack.c.bf16 %v396_v28, %v394_v27 }
  0xf5   : > { %1417 = vmatprep.subr.bf16.mxu0 %v1932_v30  ;;  %1425 = vmatprep.subr.bf16.mxu1 %v1932_v30 }
  0xf6   : > { %v1573_v32 = vpop.eup %1572  ;;  %1419 = vmatpush1.bf16.msra.mxu0 %v1930_v29  ;;  %1427 = vmatpush1.bf16.msra.mxu1 %v1930_v29 }
  0xf7   : > { %v1575_v33 = vpop.eup %1574  ;;  %v397_v36 = vmul.f32 %v1573_v32, %v1389_v31  ;;  %v765_v32 = vrot.slane %v1398_v26, %v1918_v14 }
  0xf8   : > { %v1577_v37 = vpop.eup %1576  ;;  %v398_v38 = vmul.f32 %v1575_v33, %v1390_v35  ;;  %v769_v35 = vrot.slane %v1398_v26, %v1920_v15 }
  0xf9   : > { %v1579_v40 = vpop.eup %1578  ;;  %v399_v41 = vmul.f32 %v1577_v37, %v1391_v34 }
  0xfa   : > { %v400_v42 = vmul.f32 %v1579_v40, %v1392_v39 }
  0xfb   : > { %v1422_v43 = vpack.c.bf16 %v399_v41, %v397_v36  ;;  %v1400_v36 = vld [vmem:[%s2069_s1 + $0x3] ss:$8 sm:$0x3] }
  0xfc   : > { %v1420_v44 = vpack.c.bf16 %v400_v42, %v398_v38 }
  0xfe   : > { %1421 = vmatprep.subr.bf16.mxu0 %v1420_v44  ;;  %1429 = vmatprep.subr.bf16.mxu1 %v1420_v44 }
  0xff   : > { %1423 = vmatpush1.bf16.msra.mxu0 %v1422_v43  ;;  %1431 = vmatpush1.bf16.msra.mxu1 %v1422_v43 }
 0x100   : > { %1433 = vmatprep.subr.bf16.mxu0 %v1932_v30  ;;  %1441 = vmatprep.subr.bf16.mxu1 %v1932_v30 }
 0x102   : > { %1393 = vmatmul.mubr.msk.f32.vlgmr.msra.gmra.mrb[0].mxu0 %vm404_vm0, %v403_v45  ;;  %1394 = vmatmul.mubr.msk.f32.vlgmr.msra.gmra.mrb[0].mxu1 %vm404_vm0, %v402_v46  ;;  %v1402_v46 = vld [vmem:[%s2069_s1 + $0x5] ss:$8 sm:$0x3] }
 0x103   : > { %1435 = vmatpush1.bf16.msra.mxu0 %v1930_v29  ;;  %1443 = vmatpush1.bf16.msra.mxu1 %v1930_v29 }
 0x104   : > { %1437 = vmatprep.subr.bf16.mxu0 %v1420_v44  ;;  %1445 = vmatprep.subr.bf16.mxu1 %v1420_v44 }
 0x105   : > { %645 = vmatprep.mubr.f32.mxu0 %v1716_v6  ;;  %745 = vmatprep.mubr.f32.mxu1 %v1716_v6 }
 0x107   : > { %1439 = vmatpush1.bf16.msra.mxu0 %v1422_v43  ;;  %1447 = vmatpush1.bf16.msra.mxu1 %v1422_v43 }
 0x108   : > { %1449 = vmatprep.subr.bf16.mxu0 %v1932_v30  ;;  %1457 = vmatprep.subr.bf16.mxu1 %v1932_v30 }
 0x10a   : > { %1395 = vmatmul.mubr.msk.f32.vlgmr.msra.gmra.mrb[2].mxu0 %vm404_vm0, %v577_v47  ;;  %1397 = vmatmul.mubr.msk.f32.vlgmr.msra.gmra.mrb[2].mxu1 %vm404_vm0, %v677_v48 }
 0x10b   : > { %1451 = vmatpush1.bf16.msra.mxu0 %v1930_v29  ;;  %1459 = vmatpush1.bf16.msra.mxu1 %v1930_v29 }
 0x10c   : > { %1453 = vmatprep.subr.bf16.mxu0 %v1420_v44  ;;  %1461 = vmatprep.subr.bf16.mxu1 %v1420_v44 }
 0x10d   : > { %845 = vmatprep.mubr.f32.mxu0 %v1716_v6  ;;  %945 = vmatprep.mubr.f32.mxu1 %v1716_v6 }
 0x10f   : > { %1455 = vmatpush1.bf16.msra.mxu0 %v1422_v43  ;;  %1463 = vmatpush1.bf16.msra.mxu1 %v1422_v43 }
 0x110   : > { %1465 = vmatprep.subr.bf16.mxu0 %v1932_v30  ;;  %1473 = vmatprep.subr.bf16.mxu1 %v1932_v30 }
 0x112   : > { %1399 = vmatmul.mubr.msk.f32.vlgmr.msra.gmra.mrb[4].mxu0 %vm404_vm0, %v777_v49  ;;  %1401 = vmatmul.mubr.msk.f32.vlgmr.msra.gmra.mrb[4].mxu1 %vm404_vm0, %v877_v50 }
 0x113   : > { %1467 = vmatpush1.bf16.msra.mxu0 %v1930_v29  ;;  %1475 = vmatpush1.bf16.msra.mxu1 %v1930_v29 }
 0x114   : > { %1469 = vmatprep.subr.bf16.mxu0 %v1420_v44  ;;  %1477 = vmatprep.subr.bf16.mxu1 %v1420_v44 }
 0x115   : > { %1045 = vmatprep.mubr.f32.mxu0 %v1716_v6  ;;  %1145 = vmatprep.mubr.f32.mxu1 %v1716_v6 }
 0x117   : > { %1471 = vmatpush1.bf16.msra.mxu0 %v1422_v43  ;;  %1479 = vmatpush1.bf16.msra.mxu1 %v1422_v43 }
 0x118   : > { %1481 = vmatprep.subr.bf16.mxu0 %v1932_v30 }
 0x11a   : > { %1403 = vmatmul.mubr.msk.f32.vlgmr.msra.gmra.mrb[6].mxu0 %vm404_vm0, %v977_v51  ;;  %1405 = vmatmul.mubr.msk.f32.vlgmr.msra.gmra.mrb[6].mxu1 %vm404_vm0, %v1077_v52 }
 0x11b   : > { %1483 = vmatpush1.bf16.msra.mxu0 %v1930_v29  ;;  %1245 = vmatprep.mubr.f32.mxu0 %v1716_v6 }
 0x11c   : > { %1485 = vmatprep.subr.bf16.mxu0 %v1420_v44  ;;  %v869_v44 = vrot.slane %v1400_v36, %v1920_v15 }
 0x11f   : > { %1487 = vmatpush1.bf16.msra.mxu0 %v1422_v43  ;;  %v865_v43 = vrot.slane %v1400_v36, %v1918_v14 }
 0x122   : > { %1407 = vmatmul.mubr.msk.f32.vlgmr.msra.gmra.mrb[8].mxu0 %vm404_vm0, %v1177_v53 }
 0x1d5   : > { %v474_v54 = vpop.f32.mrb[0].mxu0  ;;  %v571_v55 = vpop.f32.mrb[0].mxu1 }
 0x1d6   : > { %v476_v56 = vpop.f32.mrb[1].mxu0  ;;  %479 = vrot.lane.b32.xlu1 %v474_v54, %s1718_s6  ;;  %v573_v57 = vpop.f32.mrb[1].mxu1  ;;  %v965_v54 = vrot.slane %v1402_v46, %v1918_v14 }
 0x1d7   : > { %481 = vrot.lane.b32.xlu0 %v476_v56, %s1718_s6  ;;  %s1726_s6 = smov [#allocation7]  }
 0x1dd   : > { %v647_v58 = vpop.f32.mrb[2].mxu0  ;;  %v747_v59 = vpop.f32.mrb[2].mxu1 }
 0x1de   : > { %652 = vrot.lane.b32.xlu1 %v647_v58, %s1719_s5  ;;  %v649_v60 = vpop.f32.mrb[3].mxu0  ;;  %v749_v61 = vpop.f32.mrb[3].mxu1 }
 0x1df   : > { %654 = vrot.lane.b32.xlu0 %v649_v60, %s1719_s5  ;;  %s1642_s5 = sshll.u32 %s1726_s6, 4  ;;  %s1643_s5 = int_to_ptr.vmem [resolvable:$false] %s1642_s5 }
 0x1e0   : > { %p1645_p10 = scmp.lt.s32.totalorder %s2026_s29, %s1643_s5 }
 0x1e2   : > { %752 = vrot.lane.b32.xlu1 %v747_v59, %s1720_s7 }
 0x1e3   : > { %754 = vrot.lane.b32.xlu0 %v749_v61, %s1720_s7  ;;  %s1644_s7 = scalar_lea.vmem %s1643_s5, 512 }
 0x1e4   : > { %p1646_p13 = scmp.lt.s32.totalorder %s1644_s7, %s1638_s19 }
 0x1e5   : > { %v847_v6 = vpop.f32.mrb[4].mxu0  ;;  %v947_v62 = vpop.f32.mrb[4].mxu1 }
 0x1e6   : > { %852 = vrot.lane.b32.xlu1 %v847_v6, %s1721_s26  ;;  %v849_v63 = vpop.f32.mrb[5].mxu0  ;;  %v949_v0 = vpop.f32.mrb[5].mxu1  ;;  %p1647_p3 = por %p1646_p13, %p1645_p10 }
 0x1e7   : > { %854 = vrot.lane.b32.xlu0 %v849_v63, %s1721_s26 }
 0x1e8   : > { %p1648_p7 = pnand %p1647_p3, %p1641_p8 }
 0x1ea   : > { %952 = vrot.lane.b32.xlu1 %v947_v62, %s1722_s8 }
 0x1eb   : > { %954 = vrot.lane.b32.xlu0 %v949_v0, %s1722_s8 }
 0x1ed   : > { %v1047_v1 = vpop.f32.mrb[6].mxu0  ;;  %v1147_v2 = vpop.f32.mrb[6].mxu1 }
 0x1ee   : > { %1052 = vrot.lane.b32.xlu1 %v1047_v1, %s1723_s11  ;;  %v1049_v3 = vpop.f32.mrb[7].mxu0  ;;  %v1149_v4 = vpop.f32.mrb[7].mxu1 }
 0x1ef   : > { %1054 = vrot.lane.b32.xlu0 %v1049_v3, %s1723_s11  ;;  %v1406_v3 = vld [vmem:[%s2069_s1 + $0x7] ss:$8 sm:$0x3] }
 0x1f2   : > { %1152 = vrot.lane.b32.xlu1 %v1147_v2, %s1724_s12 }
 0x1f3   : > { %1154 = vrot.lane.b32.xlu0 %v1149_v4, %s1724_s12 }
 0x1f5   : > { %v1247_v5 = vpop.f32.mrb[8].mxu0 }
 0x1f6   : > { %1252 = vrot.lane.b32.xlu1 %v1247_v5, %s1725_s13  ;;  %v1249_v7 = vpop.f32.mrb[9].mxu0 }
 0x1f7   : > { %1254 = vrot.lane.b32.xlu0 %v1249_v7, %s1725_s13 }
 0x248   : > { %v480_v13 = vpop.permute.xlu1 %479 }
 0x249   : > { %v482_v16 = vpop.permute.xlu0 %481 }
 0x24a   : > { %v486_v17 = vsel %vm485_vm1, %v480_v13, %v482_v16  ;;  %v487_v18 = vsel %vm485_vm1, %v482_v16, %v480_v13  ;;  %v1165_v16 = vrot.slane %v1406_v3, %v1918_v14 }
 0x24b   : > { %v500_v19 = vmul.f32 %v493_v11, %v487_v18  ;;  %v501_v20 = vmul.f32 %v497_v12, %v486_v17  ;;  %v1169_v17 = vrot.slane %v1406_v3, %v1920_v15 }
 0x24d   : > { %v572_v21 = vadd.f32 %v571_v55, %v500_v19  ;;  %v574_v22 = vadd.f32 %v573_v57, %v501_v20  ;;  %v969_v55 = vrot.slane %v1402_v46, %v1920_v15  ;;  %v1404_v57 = vld [vmem:[%s2069_s1 + $0x6] ss:$8 sm:$0x3]  ;;  %v1408_v19 = vld [vmem:[%s2069_s1 + $0x10] ss:$8 sm:$0x3] }
 0x24e   : > { %v1065_v0 = vrot.slane %v1404_v57, %v1918_v14  ;;  %v1069_v1 = vrot.slane %v1404_v57, %v1920_v15  ;;  %v1265_v26 = vrot.slane %v1408_v19, %v1918_v14 }
 0x250   : > { %v653_v25 = vpop.permute.xlu1 %652 }
 0x251   : > { %v655_v27 = vpop.permute.xlu0 %654 }
 0x252   : > { %v657_v28 = vsel %vm656_vm2, %v653_v25, %v655_v27  ;;  %v658_v29 = vsel %vm656_vm2, %v655_v27, %v653_v25  ;;  %v1269_v27 = vrot.slane %v1408_v19, %v1920_v15 }
 0x253   : > { %v672_v30 = vmul.f32 %v665_v23, %v658_v29  ;;  %v673_v31 = vmul.f32 %v669_v24, %v657_v28 }
 0x254   : > { %v753_v33 = vpop.permute.xlu1 %752 }
 0x255   : > { %v674_v34 = vadd.f32 %v672_v30, %v572_v21  ;;  %v675_v37 = vadd.f32 %v673_v31, %v574_v22  ;;  %v755_v38 = vpop.permute.xlu0 %754 }
 0x256   : > { %v757_v39 = vsel %vm756_vm3, %v753_v33, %v755_v38  ;;  %v758_v40 = vsel %vm756_vm3, %v755_v38, %v753_v33 }
 0x257   : > { %v772_v41 = vmul.f32 %v765_v32, %v758_v40  ;;  %v773_v42 = vmul.f32 %v769_v35, %v757_v39 }
 0x258   : > { %v853_v45 = vpop.permute.xlu1 %852 }
 0x259   : > { %v774_v47 = vadd.f32 %v772_v41, %v674_v34  ;;  %v775_v48 = vadd.f32 %v773_v42, %v675_v37  ;;  %v855_v49 = vpop.permute.xlu0 %854 }
 0x25a   : > { %v857_v50 = vsel %vm856_vm4, %v853_v45, %v855_v49  ;;  %v858_v51 = vsel %vm856_vm4, %v855_v49, %v853_v45 }
 0x25b   : > { %v872_v52 = vmul.f32 %v865_v43, %v858_v51  ;;  %v873_v53 = vmul.f32 %v869_v44, %v857_v50 }
 0x25c   : > { %v953_v56 = vpop.permute.xlu1 %952 }
 0x25d   : > { %v874_v58 = vadd.f32 %v872_v52, %v774_v47  ;;  %v875_v59 = vadd.f32 %v873_v53, %v775_v48  ;;  %v955_v60 = vpop.permute.xlu0 %954 }
 0x25e   : > { %v957_v61 = vsel %vm956_vm5, %v953_v56, %v955_v60  ;;  %v958_v6 = vsel %vm956_vm5, %v955_v60, %v953_v56 }
 0x25f   : > { %v972_v62 = vmul.f32 %v965_v54, %v957_v61  ;;  %v973_v63 = vmul.f32 %v969_v55, %v958_v6 }
 0x260   : > { %v1053_v2 = vpop.permute.xlu1 %1052 }
 0x261   : > { %v974_v4 = vadd.f32 %v972_v62, %v874_v58  ;;  %v975_v5 = vadd.f32 %v973_v63, %v875_v59  ;;  %v1055_v7 = vpop.permute.xlu0 %1054 }
 0x262   : > { %v1057_v10 = vsel %vm1056_vm6, %v1053_v2, %v1055_v7  ;;  %v1058_v11 = vsel %vm1056_vm6, %v1055_v7, %v1053_v2 }
 0x263   : > { %v1072_v12 = vmul.f32 %v1065_v0, %v1057_v10  ;;  %v1073_v13 = vmul.f32 %v1069_v1, %v1058_v11 }
 0x264   : > { %v1153_v18 = vpop.permute.xlu1 %1152 }
 0x265   : > { %v1074_v20 = vadd.f32 %v1072_v12, %v974_v4  ;;  %v1075_v9 = vadd.f32 %v1073_v13, %v975_v5  ;;  %v1155_v21 = vpop.permute.xlu0 %1154 }
 0x266   : > { %v1157_v22 = vsel %vm1156_vm7, %v1153_v18, %v1155_v21  ;;  %v1158_v23 = vsel %vm1156_vm7, %v1155_v21, %v1153_v18 }
 0x267   : > { %v1172_v24 = vmul.f32 %v1165_v16, %v1157_v22  ;;  %v1173_v25 = vmul.f32 %v1169_v17, %v1158_v23 }
 0x268   : > { %v1253_v28 = vpop.permute.xlu1 %1252 }
 0x269   : > { %v1174_v29 = vadd.f32 %v1172_v24, %v1074_v20  ;;  %v1175_v30 = vadd.f32 %v1173_v25, %v1075_v9  ;;  %v1255_v31 = vpop.permute.xlu0 %1254 }
 0x26a   : > { %v1257_v32 = vsel %vm1256_vm8, %v1253_v28, %v1255_v31  ;;  %v1258_v35 = vsel %vm1256_vm8, %v1255_v31, %v1253_v28 }
 0x26b   : > { %v1272_v33 = vmul.f32 %v1265_v26, %v1257_v32  ;;  %v1273_v36 = vmul.f32 %v1269_v27, %v1258_v35 }
 0x26d   : > { %v1274_v8 = vadd.f32 %v1272_v33, %v1174_v29  ;;  %v1275_v34 = vadd.f32 %v1273_v36, %v1175_v30 }
 0x26f   : > { %1276 = vst [vmem:[%s228_s28] sm:$0xff] %v1274_v8  ;;  %1277 = vst [vmem:[%s228_s28 + $0x8] sm:$0xff] %v1275_v34 }
 0x270   : > { %1651 = shalt.err (!%p1648_p7)
}
 0x271   : > { %s1652_s25 = scalar_lea.hbm %s2024_s14, 256  ;;  %s1656_s11 = scalar_lea.hbm %s2072_s4, 512 }
 0x272   : > { %p1653_p9 = scmp.ne.s32.totalorder %s2024_s14, %s1652_s25  ;;  %p1657_p0 = scmp.lt.u32.totalorder %s2024_s14, %s2072_s4 }
 0x273   : > { %p1658_p11 = scmp.lt.u32.totalorder %s1656_s11, %s1652_s25  ;;  %p1660_p4 = scmp.lt.u32.totalorder %s1652_s25, %s2024_s14 }
 0x274   : > { %p1654_p2 = pnand %p1653_p9, %p1843_p12 }
 0x275   : > { %p1659_p1 = por %p1658_p11, %p1657_p0 }
 0x276   : > { %p1655_p5 = pneg %p1654_p2 }
 0x277   : > { %p1661_p6 = por %p1660_p4, %p1659_p1 }
 0x279   : > { %p1662_p8 = pnand %p1661_p6, %p1655_p5 }
 0x27b   : > { %1665 = shalt.err (!%p1662_p8)
}
 0x27c   : > { %1494 = dma.vmem_to_hbm [thread:$0]  (%p1843_p12), %s2026_s29, 256, %s2024_s14, %s1279_s20  }
 0x27d PF: > { %s1305_s23 = sand.u32 1, %s1696_s15   ;;  %p2087_p10 = scmp.ne.s32.totalorder %s2077_s22, 0 }
 0x27e   : > { %p2088_p13 = scmp.ge.s32.totalorder %s1708_s18, 2  ;;  %s1306_s9 = scalar_lea.sflag [#allocation4], %s1305_s23 }
 0x280   : > { %p1505_p3 = pnand %p2088_p13, %p2087_p10 }
 0x282   : > { %1691 = dma.done.wait (!%p1505_p3), %s1306_s9, 256  }
 0x283   : > { %1693 = vsyncadd (!%p1505_p3), %s1306_s9, 4294967040  ;;  %p18_p7 = scmp.ge.s32.totalorder %s1808_s27, 4   ;;  %s2089_s15 = smov %s1700_s16 }
 0x284   : > { %s2090_s16 = smov %s1704_s17  ;;  %s2091_s17 = smov %s1839_s24 }
 0x285   : > { %s2092_s18 = smov %s1808_s27  ;;  %20 = sbr.rel (!%p18_p7) target bundleno = 6 (0x6), region = 100 }
 0x28c   :  { %1311 = vsyncpa [#allocation3], 1 }
 0x28d   :  { %1313 = vsyncpa [#allocation3 + $0x1], 1 }
 0x28e   :  { %1314 = vsyncpa [#allocation6], 1 }
 0x28f   :  { %1315 = vsyncpa [#allocation4], 1 }
 0x290   :  { %1317 = vsyncpa [#allocation4 + $0x1], 1 }

</bundles_post_ra>
